<compile_context>
chip_gen: v6e
topology: v6e:2x2x1
jax: 0.10.0
libtpu: 0.0.40
codegen_flags: <defaults>
</compile_context>

<pallas_src>
import functools

import jax
import jax.numpy as jnp
from jax.experimental import pallas as pl
from jax.experimental.pallas import tpu as pltpu

BN_EPS = 1e-5


def _cdiv(a, b):
    return -(-a // b)


def _vmem_limit_bytes():
    """Scoped-VMEM cap: ~3/4 of physical, capped at 96 MiB.

    v5e/v6e (128 MiB physical) -> 96 MiB; v7x (64 MiB per TC) -> 48 MiB."""
    phys = 64 << 20                      # assume the smallest (v7x) if unknown
    try:
        phys = int(pltpu.get_tpu_info().vmem_capacity_bytes)
        if phys <= 0:
            phys = 64 << 20
    except Exception:
        phys = 64 << 20
    return int(min(phys * 3 // 4, 96 << 20))


def _choose_pixel_tile(p0, n_batch, r_max):
    """Pick pixels-per-tile R, tiles-per-image nT and padded pixel count P=nT*R.

    R is the whole image when it fits the VMEM budget, otherwise a lane-dense
    multiple of 128.  Ragged tails are zero-padded and masked out of the BN
    statistics inside the kernel."""
    if p0 <= r_max:
        r = p0                                   # single full-extent tile
    else:
        r = max(128, (r_max // 128) * 128)       # lane-dense tiles
    # megacore load balance: prefer >= 8 grid steps while tiles stay large
    while n_batch * _cdiv(p0, r) < 8 and r >= 2048 and r % 256 == 0:
        r //= 2
    nt = _cdiv(p0, r)
    return r, nt, nt * r


@functools.partial(jax.jit, static_argnames=("relu", "max_pixels_per_tile"))
def batch_norm_conv2d(x_nchw, w_oihw, b, gamma, beta, *, relu=True,
                      max_pixels_per_tile=None):
    """Conv2d(3x3, stride 2, pad 1) + optional ReLU + training-mode BatchNorm2d.

    x_nchw: [N, Cin, H, W]; w_oihw: [Cout, Cin, 3, 3]; b/gamma/beta: [Cout].
    Returns [N, Cout, Ho, Wo] in NCHW, like the PyTorch module.
    """
    N, Cin, H, W = x_nchw.shape
    Cout = w_oihw.shape[0]
    Ho, Wo = (H + 1) // 2, (W + 1) // 2
    P0 = Ho * Wo                                  # true output pixels per image
    K = 9 * Cin                                   # im2col contraction depth
    Kp = _cdiv(K, 8) * 8                          # sublane-align contraction dim

    # ---- tile size from a per-generation VMEM budget ------------------------
    vmem_limit = _vmem_limit_bytes()
    if max_pixels_per_tile is None:
        # per-pixel bytes per grid step: dbl-buffered bf16 in/out + f32 temps
        bytes_per_px = 4 * Kp + 16 * Cout + 64
        r_max = max(128, (vmem_limit // 2) // bytes_per_px)
    else:
        r_max = int(max_pixels_per_tile)
    R, nT, P = _choose_pixel_tile(P0, N, r_max)
    masked = P != P0                              # pad pixels must not hit BN stats

    # ---- wrapper-side im2col (cheap for small Cin): patches [N, Kp, P] bf16 --
    # TODO(synk): for large Cin (>= ~128) assemble the 9 taps inside the kernel
    # instead of materializing im2col in HBM.
    pad_h, pad_w = 2 * Ho - H, 2 * Wo - W
    xpad = jnp.pad(x_nchw.astype(jnp.float32),
                   ((0, 0), (0, 0), (1, pad_h), (1, pad_w)))
    taps = [xpad[:, :, kh:kh + 2 * Ho:2, kw:kw + 2 * Wo:2]
            for kh in range(3) for kw in range(3)]          # 9 x [N, Cin, Ho, Wo]
    patches = jnp.stack(taps, axis=1).reshape(N, K, P0)     # (kh,kw,cin)-major K
    patches = jnp.pad(patches, ((0, 0), (0, Kp - K), (0, P - P0)))
    patches = patches.astype(jnp.bfloat16)

    # ---- parameters: [Cout, Kp] weight, [Cout, 1] bias (no channel padding) ---
    w_mat = jnp.transpose(w_oihw, (0, 2, 3, 1)).reshape(Cout, K)
    w_mat = jnp.pad(w_mat, ((0, 0), (0, Kp - K))).astype(jnp.bfloat16)
    b_col = b.astype(jnp.float32).reshape(Cout, 1)

    # ------------------- pass 1: conv + bias + ReLU + partial BN stats --------
    def conv_relu_stats_kernel(p_ref, w_ref, b_ref, y_ref, st_ref):
        # [Cout, R] = [Cout, Kp] @ [Kp, R], f32 MXU accumulation
        y = jnp.dot(w_ref[...], p_ref[...],
                    preferred_element_type=jnp.float32) + b_ref[...]
        if relu:
            y = jnp.maximum(y, 0.0)
        y_ref[...] = y.astype(y_ref.dtype)        # bf16 store, pixels lane-dense
        if masked:
            pix = (pl.program_id(1) * R
                   + jax.lax.broadcasted_iota(jnp.int32, (1, R), 1))
            y = jnp.where(pix < P0, y, 0.0)       # drop padded pixels from stats
        st_ref[:, 0:1] = jnp.sum(y, axis=1, keepdims=True)
        st_ref[:, 1:2] = jnp.sum(y * y, axis=1, keepdims=True)

    y_bf16, stats = pl.pallas_call(
        conv_relu_stats_kernel,
        out_shape=(jax.ShapeDtypeStruct((N, Cout, P), jnp.bfloat16),
                   jax.ShapeDtypeStruct((N, nT, Cout, 2), jnp.float32)),
        grid_spec=pltpu.PrefetchScalarGridSpec(
            num_scalar_prefetch=0,
            grid=(N, nT),
            in_specs=[
                pl.BlockSpec((None, Kp, R), lambda n, t: (n, 0, t)),
                pl.BlockSpec((Cout, Kp), lambda n, t: (0, 0)),
                pl.BlockSpec((Cout, 1), lambda n, t: (0, 0)),
            ],
            out_specs=[
                pl.BlockSpec((None, Cout, R), lambda n, t: (n, 0, t)),
                pl.BlockSpec((None, None, Cout, 2), lambda n, t: (n, t, 0, 0)),
            ]),
        compiler_params=pltpu.CompilerParams(
            dimension_semantics=("parallel", "parallel"),
            vmem_limit_bytes=vmem_limit),
    )(patches, w_mat, b_col)

    # ---- combine per-tile partials into global batch statistics (tiny glue) --
    count = float(N * P0)
    totals = jnp.sum(stats, axis=(0, 1))                     # [Cout, 2]
    mean = totals[:, 0] / count
    # TODO(synk): sum/sum-of-squares variance can lose precision for very large
    # N*Ho*Wo; a shifted / Welford-style combine would be more robust.
    var = jnp.maximum(totals[:, 1] / count - mean * mean, 0.0)
    inv_std = jax.lax.rsqrt(var + BN_EPS)
    g = gamma.astype(jnp.float32)
    scale = (g * inv_std).reshape(Cout, 1)
    shift = (beta.astype(jnp.float32) - mean * g * inv_std).reshape(Cout, 1)

    # ------------------- pass 2: affine normalize, fused epilogue -------------
    # Writes directly into the final NCHW-flattened (N, Cout, Ho*Wo) array.
    # (input_output_aliases not applicable: bf16 input vs f32 output.)
    def bn_affine_kernel(y_ref, sc_ref, sh_ref, o_ref):
        o_ref[...] = y_ref[...].astype(jnp.float32) * sc_ref[...] + sh_ref[...]

    out_flat = pl.pallas_call(
        bn_affine_kernel,
        out_shape=jax.ShapeDtypeStruct((N, Cout, P), jnp.float32),
        grid_spec=pltpu.PrefetchScalarGridSpec(
            num_scalar_prefetch=0,
            grid=(N, nT),
            in_specs=[
                pl.BlockSpec((None, Cout, R), lambda n, t: (n, 0, t)),
                pl.BlockSpec((Cout, 1), lambda n, t: (0, 0)),
                pl.BlockSpec((Cout, 1), lambda n, t: (0, 0)),
            ],
            out_specs=pl.BlockSpec((None, Cout, R), lambda n, t: (n, 0, t))),
        compiler_params=pltpu.CompilerParams(
            dimension_semantics=("parallel", "parallel"),
            vmem_limit_bytes=vmem_limit),
    )(y_bf16, scale, shift)

    if masked:
        out_flat = out_flat[:, :, :P0]            # drop padded pixels (only if any)
    return out_flat.reshape(N, Cout, Ho, Wo)


def _reference(x, w, b, gamma, beta, relu=True):
    """Pure-JAX f32 reference for the PyTorch module's forward."""
    x_nhwc = jnp.transpose(x, (0, 2, 3, 1))
    w_hwio = jnp.transpose(w, (2, 3, 1, 0))
    y = jax.lax.conv_general_dilated(
        x_nhwc, w_hwio, window_strides=(2, 2), padding=((1, 1), (1, 1)),
        dimension_numbers=("NHWC", "HWIO", "NHWC")) + b
    if relu:
        y = jnp.maximum(y, 0.0)
    mu = jnp.mean(y, axis=(0, 1, 2))
    var = jnp.mean((y - mu) ** 2, axis=(0, 1, 2))
    y = (y - mu) * jax.lax.rsqrt(var + BN_EPS) * gamma + beta
    return jnp.transpose(y, (0, 3, 1, 2))


if __name__ == "__main__":
    root_key = jax.random.PRNGKey(0)

    def run_case(case_id, n, cin, h, w_sp, cout, max_px):
        k_x, k_w, k_b = jax.random.split(jax.random.fold_in(root_key, case_id), 3)
        x = jax.random.normal(k_x, (n, cin, h, w_sp), dtype=jnp.float32)
        bound = 1.0 / (9.0 * cin) ** 0.5            # PyTorch Conv2d default init
        w = jax.random.uniform(k_w, (cout, cin, 3, 3), jnp.float32, -bound, bound)
        b = jax.random.uniform(k_b, (cout,), jnp.float32, -bound, bound)
        gamma = jnp.ones((cout,), jnp.float32)       # BatchNorm2d default init
        beta = jnp.zeros((cout,), jnp.float32)

        out = jax.block_until_ready(
            batch_norm_conv2d(x, w, b, gamma, beta, relu=True,
                              max_pixels_per_tile=max_px))
        ho, wo = (h + 1) // 2, (w_sp + 1) // 2
        assert out.shape == (n, cout, ho, wo), out.shape
        assert bool(jnp.all(jnp.isfinite(out)))
        ref = _reference(x, w, b, gamma, beta, relu=True)
        err = float(jnp.max(jnp.abs(out - ref)))
        assert err < 0.1, f"case {case_id}: max abs error vs f32 reference {err}"

    # main case: VMEM-budget-derived tiles (whole image fits -> grid (2, 1))
    run_case(0, 2, 4, 16, 16, 32, None)
    # robustness case: odd spatial dims + forced small tile budget -> lane-dense
    # 128-pixel tiles, multi-tile grid (1, 2) with a padded & masked ragged tail
    run_case(1, 1, 3, 23, 23, 16, 32)

    print("KERNEL_OK")
</pallas_src>

<mosaic_0001>
module attributes {stable_mosaic.version = 11 : i64} {
  func.func @conv_relu_stats_kernel(%arg0: i32, %arg1: i32, %arg2: memref<1x40x64xbf16, #tpu.memory_space<vmem>>, %arg3: memref<32x40xbf16, #tpu.memory_space<vmem>>, %arg4: memref<32x1xf32, #tpu.memory_space<vmem>>, %arg5: memref<1x32x64xbf16, #tpu.memory_space<vmem>>, %arg6: memref<1x1x32x2xf32, #tpu.memory_space<vmem>>) attributes {dimension_semantics = [#tpu.dimension_semantics<parallel>, #tpu.dimension_semantics<parallel>], iteration_bounds = array<i64: 2, 1>, scalar_prefetch = 0 : i64, scratch_operands = 0 : i64, tpu.core_type = #tpu.core_type<tc>, window_params = [{transform_indices = @transform_0, window_bounds = array<i64: 1, 40, 64>}, {pipeline_mode = #tpu.pipeline_mode<synchronous>, transform_indices = @transform_1, window_bounds = array<i64: 32, 40>}, {pipeline_mode = #tpu.pipeline_mode<synchronous>, transform_indices = @transform_2, window_bounds = array<i64: 32, 1>}, {transform_indices = @transform_3, window_bounds = array<i64: 1, 32, 64>}, {transform_indices = @transform_4, window_bounds = array<i64: 1, 1, 32, 2>}]} {
    %c0 = arith.constant 0 : index
    %c0_0 = arith.constant 0 : index
    %0 = vector.load %arg3[%c0, %c0_0] : memref<32x40xbf16, #tpu.memory_space<vmem>>, vector<32x40xbf16>
    %c0_1 = arith.constant 0 : index
    %c0_2 = arith.constant 0 : index
    %c0_3 = arith.constant 0 : index
    %1 = vector.load %arg2[%c0_1, %c0_2, %c0_3] : memref<1x40x64xbf16, #tpu.memory_space<vmem>>, vector<1x40x64xbf16>
    %2 = vector.shape_cast %1 : vector<1x40x64xbf16> to vector<40x64xbf16>
    %cst = arith.constant dense<0.000000e+00> : vector<32x64xf32>
    %3 = tpu.matmul %0, %2, %cst {dimension_numbers = #tpu.dot_dimension_numbers<[1], [0], [0], [1], [0, 0, 1, 1], [], []>} : vector<32x40xbf16>, vector<40x64xbf16>, vector<32x64xf32> -> vector<32x64xf32>
    %c0_4 = arith.constant 0 : index
    %c0_5 = arith.constant 0 : index
    %4 = vector.load %arg4[%c0_4, %c0_5] : memref<32x1xf32, #tpu.memory_space<vmem>>, vector<32x1xf32>
    %5 = vector.broadcast %4 : vector<32x1xf32> to vector<32x64xf32>
    %6 = arith.addf %3, %5 : vector<32x64xf32>
    %cst_6 = arith.constant 0.000000e+00 : f32
    %7 = vector.broadcast %cst_6 : f32 to vector<32x64xf32>
    %8 = arith.maximumf %6, %7 : vector<32x64xf32>
    %9 = arith.truncf %8 : vector<32x64xf32> to vector<32x64xbf16>
    %c0_7 = arith.constant 0 : index
    %c0_8 = arith.constant 0 : index
    %c0_9 = arith.constant 0 : index
    %10 = vector.load %arg5[%c0_7, %c0_8, %c0_9] : memref<1x32x64xbf16, #tpu.memory_space<vmem>>, vector<1x32x64xbf16>
    %11 = vector.shape_cast %10 : vector<1x32x64xbf16> to vector<32x64xbf16>
    %12 = vector.shape_cast %9 : vector<32x64xbf16> to vector<1x32x64xbf16>
    tpu.vector_store %arg5[%c0_7, %c0_8, %c0_9], %12 {strides = array<i32>} : memref<1x32x64xbf16, #tpu.memory_space<vmem>>, vector<1x32x64xbf16>,
    %cst_10 = arith.constant dense<0.000000e+00> : vector<32xf32>
    %13 = vector.multi_reduction <add>, %8, %cst_10 [1] : vector<32x64xf32> to vector<32xf32>
    %14 = vector.shape_cast %13 : vector<32xf32> to vector<32x1xf32>
    %c0_11 = arith.constant 0 : index
    %c0_12 = arith.constant 0 : index
    %c0_13 = arith.constant 0 : index
    %c0_14 = arith.constant 0 : index
    %15 = vector.load %arg6[%c0_11, %c0_12, %c0_13, %c0_14] : memref<1x1x32x2xf32, #tpu.memory_space<vmem>>, vector<1x1x32x1xf32>
    %16 = vector.shape_cast %15 : vector<1x1x32x1xf32> to vector<32x1xf32>
    %17 = vector.shape_cast %14 : vector<32x1xf32> to vector<1x1x32x1xf32>
    tpu.vector_store %arg6[%c0_11, %c0_12, %c0_13, %c0_14], %17 {strides = array<i32>} : memref<1x1x32x2xf32, #tpu.memory_space<vmem>>, vector<1x1x32x1xf32>,
    %18 = arith.mulf %8, %8 : vector<32x64xf32>
    %cst_15 = arith.constant dense<0.000000e+00> : vector<32xf32>
    %19 = vector.multi_reduction <add>, %18, %cst_15 [1] : vector<32x64xf32> to vector<32xf32>
    %20 = vector.shape_cast %19 : vector<32xf32> to vector<32x1xf32>
    %c0_16 = arith.constant 0 : index
    %c0_17 = arith.constant 0 : index
    %c0_18 = arith.constant 0 : index
    %c1 = arith.constant 1 : index
    %21 = vector.load %arg6[%c0_16, %c0_17, %c0_18, %c1] : memref<1x1x32x2xf32, #tpu.memory_space<vmem>>, vector<1x1x32x1xf32>
    %22 = vector.shape_cast %21 : vector<1x1x32x1xf32> to vector<32x1xf32>
    %23 = vector.shape_cast %20 : vector<32x1xf32> to vector<1x1x32x1xf32>
    tpu.vector_store %arg6[%c0_16, %c0_17, %c0_18, %c1], %23 {strides = array<i32>} : memref<1x1x32x2xf32, #tpu.memory_space<vmem>>, vector<1x1x32x1xf32>,
    return
  }
  func.func @transform_0(%arg0: i32, %arg1: i32) -> (i32, i32, i32) {
    %c0_i32 = arith.constant 0 : i32
    %c0_i32_0 = arith.constant 0 : i32
    return %arg0, %c0_i32, %arg1 : i32, i32, i32
  }
  func.func @transform_1(%arg0: i32, %arg1: i32) -> (i32, i32) {
    %c0_i32 = arith.constant 0 : i32
    %c0_i32_0 = arith.constant 0 : i32
    %c0_i32_1 = arith.constant 0 : i32
    return %c0_i32, %c0_i32_0 : i32, i32
  }
  func.func @transform_2(%arg0: i32, %arg1: i32) -> (i32, i32) {
    %c0_i32 = arith.constant 0 : i32
    %c0_i32_0 = arith.constant 0 : i32
    %c0_i32_1 = arith.constant 0 : i32
    return %c0_i32, %c0_i32_0 : i32, i32
  }
  func.func @transform_3(%arg0: i32, %arg1: i32) -> (i32, i32, i32) {
    %c0_i32 = arith.constant 0 : i32
    %c0_i32_0 = arith.constant 0 : i32
    return %arg0, %c0_i32, %arg1 : i32, i32, i32
  }
  func.func @transform_4(%arg0: i32, %arg1: i32) -> (i32, i32, i32, i32) {
    %c0_i32 = arith.constant 0 : i32
    %c0_i32_0 = arith.constant 0 : i32
    %c0_i32_1 = arith.constant 0 : i32
    return %arg0, %arg1, %c0_i32, %c0_i32_0 : i32, i32, i32, i32
  }
}

module attributes {stable_mosaic.version = 11 : i64} {
  func.func @bn_affine_kernel(%arg0: i32, %arg1: i32, %arg2: memref<1x32x64xbf16, #tpu.memory_space<vmem>>, %arg3: memref<32x1xf32, #tpu.memory_space<vmem>>, %arg4: memref<32x1xf32, #tpu.memory_space<vmem>>, %arg5: memref<1x32x64xf32, #tpu.memory_space<vmem>>) attributes {dimension_semantics = [#tpu.dimension_semantics<parallel>, #tpu.dimension_semantics<parallel>], iteration_bounds = array<i64: 2, 1>, scalar_prefetch = 0 : i64, scratch_operands = 0 : i64, tpu.core_type = #tpu.core_type<tc>, window_params = [{transform_indices = @transform_0, window_bounds = array<i64: 1, 32, 64>}, {pipeline_mode = #tpu.pipeline_mode<synchronous>, transform_indices = @transform_1, window_bounds = array<i64: 32, 1>}, {pipeline_mode = #tpu.pipeline_mode<synchronous>, transform_indices = @transform_2, window_bounds = array<i64: 32, 1>}, {transform_indices = @transform_3, window_bounds = array<i64: 1, 32, 64>}]} {
    %c0 = arith.constant 0 : index
    %c0_0 = arith.constant 0 : index
    %c0_1 = arith.constant 0 : index
    %0 = vector.load %arg2[%c0, %c0_0, %c0_1] : memref<1x32x64xbf16, #tpu.memory_space<vmem>>, vector<1x32x64xbf16>
    %1 = vector.shape_cast %0 : vector<1x32x64xbf16> to vector<32x64xbf16>
    %2 = arith.extf %1 : vector<32x64xbf16> to vector<32x64xf32>
    %c0_2 = arith.constant 0 : index
    %c0_3 = arith.constant 0 : index
    %3 = vector.load %arg3[%c0_2, %c0_3] : memref<32x1xf32, #tpu.memory_space<vmem>>, vector<32x1xf32>
    %4 = vector.broadcast %3 : vector<32x1xf32> to vector<32x64xf32>
    %5 = arith.mulf %2, %4 : vector<32x64xf32>
    %c0_4 = arith.constant 0 : index
    %c0_5 = arith.constant 0 : index
    %6 = vector.load %arg4[%c0_4, %c0_5] : memref<32x1xf32, #tpu.memory_space<vmem>>, vector<32x1xf32>
    %7 = vector.broadcast %6 : vector<32x1xf32> to vector<32x64xf32>
    %8 = arith.addf %5, %7 : vector<32x64xf32>
    %c0_6 = arith.constant 0 : index
    %c0_7 = arith.constant 0 : index
    %c0_8 = arith.constant 0 : index
    %9 = vector.load %arg5[%c0_6, %c0_7, %c0_8] : memref<1x32x64xf32, #tpu.memory_space<vmem>>, vector<1x32x64xf32>
    %10 = vector.shape_cast %9 : vector<1x32x64xf32> to vector<32x64xf32>
    %11 = vector.shape_cast %8 : vector<32x64xf32> to vector<1x32x64xf32>
    tpu.vector_store %arg5[%c0_6, %c0_7, %c0_8], %11 {strides = array<i32>} : memref<1x32x64xf32, #tpu.memory_space<vmem>>, vector<1x32x64xf32>,
    return
  }
  func.func @transform_0(%arg0: i32, %arg1: i32) -> (i32, i32, i32) {
    %c0_i32 = arith.constant 0 : i32
    %c0_i32_0 = arith.constant 0 : i32
    return %arg0, %c0_i32, %arg1 : i32, i32, i32
  }
  func.func @transform_1(%arg0: i32, %arg1: i32) -> (i32, i32) {
    %c0_i32 = arith.constant 0 : i32
    %c0_i32_0 = arith.constant 0 : i32
    %c0_i32_1 = arith.constant 0 : i32
    return %c0_i32, %c0_i32_0 : i32, i32
  }
  func.func @transform_2(%arg0: i32, %arg1: i32) -> (i32, i32) {
    %c0_i32 = arith.constant 0 : i32
    %c0_i32_0 = arith.constant 0 : i32
    %c0_i32_1 = arith.constant 0 : i32
    return %c0_i32, %c0_i32_0 : i32, i32
  }
  func.func @transform_3(%arg0: i32, %arg1: i32) -> (i32, i32, i32) {
    %c0_i32 = arith.constant 0 : i32
    %c0_i32_0 = arith.constant 0 : i32
    return %arg0, %c0_i32, %arg1 : i32, i32, i32
  }
}

</mosaic_0001>

<bundles_post_ra>
// kernel: batch_norm_conv2d.3
= control target key start
LH: loop header
LB: loop body
LE: loop exit
PB: predicated region body
PF: predicated region fallthrough
CT: control target
= control target key end

     0   :  { %s448_s12 = smov 0   ;;  %s450_s13 = smov 0   ;;  %s509_s0 = inlined_call_operand.vmem [shape: bf16[2,32,64], index: 0, kind: input, shape index: {}]   ;;  %s510_s1 = inlined_call_operand.vmem [shape: f32[32,1], index: 1, kind: input, shape index: {}]   ;;  %s511_s2 = inlined_call_operand.vmem [shape: f32[32,1], index: 2, kind: input, shape index: {}]   ;;  %s512_s3 = inlined_call_operand.vmem [shape: f32[2,32,64], index: 3, kind: output, shape index: {}]  }
   0x1   :  { %s452_s14 = smov 0  }
   0x2 LB: > { %s25_s15 = sadd.s32 1, %s421_s13  ;;  %p358_p0 = scmp.ge.s32.totalorder %s425_s14, 1  ;;  %s425_s14 = sphi %s452_s14, %s13_s14   ;;  %s421_s13 = sphi %s450_s13, %s514_s13   ;;  %s417_s12 = sphi %s448_s12, %s513_s12  }
   0x3   : > { %p27_p1 = scmp.ge.s32.totalorder %s25_s15, 2  ;;  %p156_p2 = scmp.lt.s32.totalorder %s425_s14, 3 }
   0x5   : > { %s516_s15 = smov (%p27_p1, %s25_s15), 0  ;;  %p157_p3 = pnand %p358_p0, %p156_p2 }
   0x6   : > { %p186_p4 = scmp.lt.s32.totalorder (!%p157_p3), %s417_s12, 1 }
   0x7   : > { %160 = sbr.rel (%p157_p3) target bundleno = 153 (0x99), region = 32 }
   0xc   : > { %v212_v0 = vld [vmem:[%s510_s1 + $0x10] sm:$0xff]  ;;  %v210_v1 = vld [vmem:[%s510_s1] sm:$0xff]  ;;  %v427_v2 = vmov 0   ;;  %v213_v3 = vld [vmem:[%s510_s1 + $0x18] sm:$0xff]  ;;  %s518_s12 = smov (!%p186_p4, %s417_s12), 1  ;;  %vm266_vm0 = vcmask 523264  }
   0xd   : > { %402 = vset.pattern.permute.xlu1 %v427_v2  ;;  %401 = vset.pattern.permute.xlu0 %v427_v2  ;;  %v211_v4 = vld [vmem:[%s510_s1 + $0x8] sm:$0xff]  ;;  %v238_v6 = vld [vmem:[%s511_s2] sm:$0xff]  ;;  %v241_v7 = vld [vmem:[%s511_s2 + $0x18] sm:$0xff]  ;;  %s365_s5 = sshll.u32 %s518_s12, 4  ;;  %s366_s9 = sshll.u32 %s518_s12, 5 }
   0xe   : > { %226 = vperm.xlu1 %402, %v212_v0   ;;  %216 = vperm.xlu0 %401, %v210_v1   ;;  %v239_v5 = vld [vmem:[%s511_s2 + $0x8] sm:$0xff]  ;;  %v240_v8 = vld [vmem:[%s511_s2 + $0x10] sm:$0xff]  ;;  %s193_s8 = scalar_lea.vmem %s509_s0, %s365_s5  ;;  %s201_s16 = scalar_lea.vmem %s512_s3, %s366_s9 }
   0xf   : > { %v368_v11 = vld [vmem:[%s193_s8] sm:$0xff]   ;;  %v375_v14 = vld [vmem:[%s193_s8 + $0x8] sm:$0xff]  }
  0x10   : > { %v369_v12 = vunpack.c.l.bf16 %v368_v11  ;;  %v370_v13 = vunpack.c.h.bf16 %v368_v11  ;;  %v373_v17 = vunpack.c.l.bf16 %v375_v14  ;;  %v374_v19 = vunpack.c.h.bf16 %v375_v14 }
  0x12   : > { %231 = vperm.xlu1 %402, %v213_v3   ;;  %221 = vperm.xlu0 %401, %v211_v4  }
  0x16   : > { %249 = vperm.xlu1 %402, %v239_v5   ;;  %244 = vperm.xlu0 %401, %v238_v6  }
  0x1a   : > { %259 = vperm.xlu1 %402, %v241_v7   ;;  %254 = vperm.xlu0 %401, %v240_v8  }
  0x89   : > { %v227_v9 = vpop.permute.xlu1 %226  ;;  %v217_v10 = vpop.permute.xlu0 %216 }
  0x8a   : > { %v234_v18 = vmul.f32 %v369_v12, %v217_v10  ;;  %v236_v25 = vmul.f32 %v373_v17, %v227_v9 }
  0x8d   : > { %v232_v15 = vpop.permute.xlu1 %231  ;;  %v222_v16 = vpop.permute.xlu0 %221 }
  0x8e   : > { %v235_v20 = vmul.f32 %v370_v13, %v222_v16  ;;  %v237_v26 = vmul.f32 %v374_v19, %v232_v15 }
  0x91   : > { %v250_v21 = vpop.permute.xlu1 %249  ;;  %v245_v22 = vpop.permute.xlu0 %244 }
  0x92   : > { %v263_v23 = vadd.f32 %v250_v21, %v235_v20  ;;  %v262_v24 = vadd.f32 %v245_v22, %v234_v18 }
  0x94   : > { %268 = vst.msk [vmem:[%s201_s16 + $0x8] sm:$0xff] %vm266_vm0, %v263_v23  ;;  %267 = vst.msk [vmem:[%s201_s16] sm:$0xff] %vm266_vm0, %v262_v24 }
  0x95   : > { %v260_v27 = vpop.permute.xlu1 %259  ;;  %v255_v28 = vpop.permute.xlu0 %254 }
  0x96   : > { %v265_v29 = vadd.f32 %v260_v27, %v237_v26  ;;  %v264_v30 = vadd.f32 %v255_v28, %v236_v25 }
  0x98   : > { %270 = vst.msk [vmem:[%s201_s16 + $0x18] sm:$0xff] %vm266_vm0, %v265_v29  ;;  %269 = vst.msk [vmem:[%s201_s16 + $0x10] sm:$0xff] %vm266_vm0, %v264_v30 }
  0x99 PF: > { %s13_s14 = sadd.s32 1, %s425_s14   ;;  %s513_s12 = smov %s421_s13 }
  0x9a   : > { %p10_p5 = scmp.ge.s32.totalorder %s13_s14, 4   ;;  %s514_s13 = smov %s516_s15 }
  0x9c   :  { %12 = sbr.rel (!%p10_p5) target bundleno = 2 (0x2), region = 62 }

// kernel: batch_norm_conv2d.2
= control target key start
LH: loop header
LB: loop body
LE: loop exit
PB: predicated region body
PF: predicated region fallthrough
CT: control target
= control target key end

     0   :  { %s699_s15 = smov 0   ;;  %s701_s16 = smov 0   ;;  %s772_s0 = inlined_call_operand.vmem [shape: bf16[2,40,64], index: 0, kind: input, shape index: {}]   ;;  %s773_s1 = inlined_call_operand.vmem [shape: bf16[32,40], index: 1, kind: input, shape index: {}]   ;;  %s774_s2 = inlined_call_operand.vmem [shape: f32[32,1], index: 2, kind: input, shape index: {}]   ;;  %s775_s3 = inlined_call_operand.vmem [shape: bf16[2,32,64], index: 3, kind: output, shape index: {0}]   ;;  %s776_s4 = inlined_call_operand.vmem [shape: f32[2,1,32,2], index: 4, kind: output, shape index: {1}]  }
   0x1   :  { %s703_s17 = smov 0  }
   0x2 LB: > { %s27_s18 = sadd.s32 1, %s667_s16  ;;  %p575_p0 = scmp.ge.s32.totalorder %s671_s17, 1  ;;  %s671_s17 = sphi %s703_s17, %s15_s17   ;;  %s667_s16 = sphi %s701_s16, %s778_s16   ;;  %s663_s15 = sphi %s699_s15, %s777_s15  }
   0x3   : > { %p29_p1 = scmp.ge.s32.totalorder %s27_s18, 2  ;;  %p186_p2 = scmp.lt.s32.totalorder %s671_s17, 3 }
   0x5   : > { %s780_s18 = smov (%p29_p1, %s27_s18), 0  ;;  %p187_p3 = pnand %p575_p0, %p186_p2 }
   0x6   : > { %p227_p4 = scmp.lt.s32.totalorder (!%p187_p3), %s663_s15, 1 }
   0x7   : > { %190 = sbr.rel (%p187_p3) target bundleno = 382 (0x17e), region = 32 }
   0xc   : > { %v647_v0 = vld [vmem:[%s773_s1] sm:$0xff]   ;;  %vm311_vm0 = vcmask 326656   ;;  %s782_s15 = smov (!%p227_p4, %s663_s15), 1  ;;  %v264_v1 = vld [vmem:[%s774_s2 + $0x10] sm:$0xff]  ;;  %v673_v2 = vmov 0   ;;  %v265_v4 = vld [vmem:[%s774_s2 + $0x18] sm:$0xff] }
   0xd   : > { %611 = vmatprep.mubr.msk.bf16.mxu0 %vm311_vm0, %v647_v0  ;;  %643 = vset.pattern.permute.xlu1 %v673_v2  ;;  %v262_v3 = vld [vmem:[%s774_s2] sm:$0xff]  ;;  %s616_s25 = smul.u32 20, %s782_s15  ;;  %vm318_vm1 = vcmask 1043456   ;;  %v263_v5 = vld [vmem:[%s774_s2 + $0x8] sm:$0xff]  ;;  %s594_s9 = sshll.u32 %s782_s15, 4  ;;  %vm396_vm2 = vcmask 523264  }
   0xe   : > { %278 = vperm.xlu1 %643, %v264_v1   ;;  %642 = vset.pattern.permute.xlu0 %v673_v2  ;;  %v648_v10 = vld [vmem:[%s773_s1 + $0x8] sm:$0xff]   ;;  %s242_s12 = scalar_lea.vmem %s775_s3, %s594_s9  ;;  %vm391_vm3 = vcmask 519168   ;;  %s595_s13 = sshll.u32 %s782_s15, 5  ;;  %vm409_vm4 = vcmask 7168   ;;  %vm430_vm5 = vcmask 15368  }
   0xf   : > { %268 = vperm.xlu0 %642, %v262_v3   ;;  %s234_s30 = scalar_lea.vmem %s772_s0, %s616_s25  ;;  %s251_s20 = scalar_lea.vmem %s776_s4, %s595_s13 }
  0x10   : > { %v644_v6 = vld [vmem:[%s234_s30 + $0x10] ss:$0 sps:$4 sm:$0xff]   ;;  %v645_v7 = vld [vmem:[%s234_s30 + $0x8] sm:$0xff]   ;;  %v646_v9 = vld [vmem:[%s234_s30] sm:$0xff]  }
  0x11   : > { %615 = vmatprep.subr.msk.bf16.mxu0 %vm318_vm1, %v644_v6  ;;  %v320_v8 = vsel %vm318_vm1, %v644_v6, 0 }
  0x12   : > { %283 = vperm.xlu1 %643, %v265_v4   ;;  %606 = vmatpush3.bf16.msra.mxu0 %v320_v8 }
  0x13   : > { %273 = vperm.xlu0 %642, %v263_v5   ;;  %607 = vmatprep.subr.bf16.mxu0 %v645_v7 }
  0x16   : > { %608 = vmatpush3.bf16.msra.mxu0 %v645_v7 }
  0x17   : > { %609 = vmatprep.subr.bf16.mxu0 %v646_v9 }
  0x1a   : > { %610 = vmatpush3.bf16.msra.mxu0 %v646_v9 }
  0x1d   : > { %612 = vmatmul.mubr.msk.bf16.vlgmr.msra.gmra.mxu0 %vm311_vm0, %v648_v10 }
  0x89   : > { %v279_v11 = vpop.permute.xlu1 %278 }
  0x8a   : > { %v269_v12 = vpop.permute.xlu0 %268 }
  0x8d   : > { %v284_v18 = vpop.permute.xlu1 %283 }
  0x8e   : > { %v274_v24 = vpop.permute.xlu0 %273 }
  0xdd   : > { %v613_v13 = vpop.f32.mrf.mxu0 }
  0xde   : > { %v365_v14 = vadd.f32 %v613_v13, %v279_v11 }
  0xdf   : > { %v356_v15 = vpop.f32.mrf.mxu0 }
  0xe0   : > { %v373_v16 = vmax.f32 %v365_v14, 0.0  ;;  %v357_v17 = vadd.f32 %v356_v15, %v269_v12 }
  0xe1   : > { %v614_v19 = vpop.f32.mrf.mxu0 }
  0xe2   : > { %v598_v20 = vpack.c.bf16 %v373_v16, %v373_v16  ;;  %v371_v21 = vmax.f32 %v357_v17, 0.0  ;;  %v368_v22 = vadd.f32 %v614_v19, %v284_v18  ;;  %v403_v23 = vsel %vm396_vm2, %v373_v16, 0.0 }
  0xe3   : > { %404 = vadd.xlane.f32.xlu0 %v403_v23  ;;  %v359_v25 = vpop.f32.mrf.mxu0  ;;  %v416_v37 = vmul.f32 %v373_v16, %v373_v16 }
  0xe4   : > { %394 = vst.msk [vmem:[%s242_s12 + $0x8] sm:$0xf] %vm391_vm3, %v598_v20  ;;  %v596_v26 = vpack.c.bf16 %v371_v21, %v371_v21  ;;  %v374_v27 = vmax.f32 %v368_v22, 0.0  ;;  %v360_v28 = vadd.f32 %v359_v25, %v274_v24  ;;  %v414_v29 = vmul.f32 %v371_v21, %v371_v21 }
  0xe5   : > { %v397_v33 = vsel %vm396_vm2, %v371_v21, 0.0  ;;  %v424_v39 = vsel %vm396_vm2, %v416_v37, 0.0 }
  0xe6   : > { %392 = vst.msk [vmem:[%s242_s12] sm:$0xf] %vm391_vm3, %v596_v26  ;;  %v599_v30 = vpack.c.bf16 %v374_v27, %v374_v27  ;;  %v372_v31 = vmax.f32 %v360_v28, 0.0  ;;  %v418_v32 = vsel %vm396_vm2, %v414_v29, 0.0  ;;  %v406_v36 = vsel %vm396_vm2, %v374_v27, 0.0 }
  0xe7   : > { %419 = vadd.xlane.f32.xlu1 %v418_v32  ;;  %398 = vadd.xlane.f32.xlu0 %v397_v33  ;;  %v417_v41 = vmul.f32 %v374_v27, %v374_v27 }
  0xe8   : > { %395 = vst.msk [vmem:[%s242_s12 + $0xc] sm:$0xf] %vm391_vm3, %v599_v30  ;;  %v597_v34 = vpack.c.bf16 %v372_v31, %v372_v31  ;;  %v400_v35 = vsel %vm396_vm2, %v372_v31, 0.0  ;;  %v415_v38 = vmul.f32 %v372_v31, %v372_v31 }
  0xe9   : > { %v427_v42 = vsel %vm396_vm2, %v417_v41, 0.0 }
  0xea   : > { %393 = vst.msk [vmem:[%s242_s12 + $0x4] sm:$0xf] %vm391_vm3, %v597_v34  ;;  %v421_v40 = vsel %vm396_vm2, %v415_v38, 0.0 }
  0xeb   : > { %401 = vadd.xlane.f32.xlu1 %v400_v35  ;;  %407 = vadd.xlane.f32.xlu0 %v406_v36 }
  0xef   : > { %425 = vadd.xlane.f32.xlu1 %v424_v39  ;;  %422 = vadd.xlane.f32.xlu0 %v421_v40 }
  0xf3   : > { %428 = vadd.xlane.f32.xlu0 %v427_v42 }
 0x16c   : > { %v405_v43 = vpop.xlane.xlu0 %404 }
 0x16d   : > { %412 = vst.msk [vmem:[%s251_s20 + $0x10] sm:$0xff] %vm409_vm4, %v405_v43 }
 0x170   : > { %v420_v44 = vpop.xlane.xlu1 %419  ;;  %v399_v45 = vpop.xlane.xlu0 %398 }
 0x171   : > { %410 = vst.msk [vmem:[%s251_s20] sm:$0xff] %vm409_vm4, %v399_v45 }
 0x172   : > { %431 = vst.msk [vmem:[%s251_s20] sm:$0xff] %vm430_vm5, %v420_v44 }
 0x174   : > { %v402_v46 = vpop.xlane.xlu1 %401  ;;  %v408_v47 = vpop.xlane.xlu0 %407 }
 0x175   : > { %411 = vst.msk [vmem:[%s251_s20 + $0x8] sm:$0xff] %vm409_vm4, %v402_v46  ;;  %413 = vst.msk [vmem:[%s251_s20 + $0x18] sm:$0xff] %vm409_vm4, %v408_v47 }
 0x178   : > { %v426_v48 = vpop.xlane.xlu1 %425  ;;  %v423_v49 = vpop.xlane.xlu0 %422 }
 0x179   : > { %433 = vst.msk [vmem:[%s251_s20 + $0x10] sm:$0xff] %vm430_vm5, %v426_v48  ;;  %432 = vst.msk [vmem:[%s251_s20 + $0x8] sm:$0xff] %vm430_vm5, %v423_v49 }
 0x17c   : > { %v429_v50 = vpop.xlane.xlu0 %428 }
 0x17d   : > { %434 = vst.msk [vmem:[%s251_s20 + $0x18] sm:$0xff] %vm430_vm5, %v429_v50 }
 0x17e PF: > { %s15_s17 = sadd.s32 1, %s671_s17   ;;  %s777_s15 = smov %s667_s16 }
 0x17f   : > { %p12_p5 = scmp.ge.s32.totalorder %s15_s17, 4   ;;  %s778_s16 = smov %s780_s18 }
 0x181   :  { %14 = sbr.rel (!%p12_p5) target bundleno = 2 (0x2), region = 74 }

</bundles_post_ra>
